<compile_context>
chip_gen: v5e
topology: v5e:2x2
jax: 0.10.0
libtpu: 0.0.40
codegen_flags: <defaults>
</compile_context>

<pallas_src>
import jax
import jax.numpy as jnp
from jax.experimental import pallas as pl
from jax.experimental.pallas import tpu as pltpu


NEG_INF = -1.0e9


def init_params(key, seq_len, ffdim):
    """Deterministic parameter init. Weights stored as (in_dim, out_dim)."""
    dims = [
        ("wq", (seq_len, seq_len)), ("bq", (1, seq_len)),
        ("wk", (seq_len, seq_len)), ("bk", (1, seq_len)),
        ("wv", (seq_len, seq_len)), ("bv", (1, seq_len)),
        ("w1", (seq_len, ffdim)),   ("b1", (1, ffdim)),
        ("w2", (ffdim, ffdim // 2)),      ("b2", (1, ffdim // 2)),
        ("w3", (ffdim // 2, ffdim // 4)), ("b3", (1, ffdim // 4)),
        ("wo", (ffdim // 4, 1)),          ("bo", (1, 1)),
    ]
    params = {}
    keys = jax.random.split(key, len(dims))
    for (name, shape), k in zip(dims, keys):
        fan_in = shape[0] if name.startswith("w") else shape[1]
        scale = 1.0 / jnp.sqrt(jnp.float32(fan_in))
        params[name] = jax.random.uniform(k, shape, jnp.float32, -1.0, 1.0) * scale
    return params


def pack_params(params, seq_len, ffdim):
    """Pack all parameters (+ causal mask) into two flat VMEM blobs.

    qkv_pack: (S+1, 3S) -- rows 0..S-1 = [wq|wk|wv], row S = [bq|bk|bv]
    mlp_pack: (R, W)    -- row-stacked, width-padded: mask, w1, b1, w2, b2,
                           w3^T, b3, wo^T, bo.  `layout[name] = (row_off, r, c)`.
    """
    S = seq_len
    w_qkv = jnp.concatenate([params["wq"], params["wk"], params["wv"]], axis=1)
    b_qkv = jnp.concatenate([params["bq"], params["bk"], params["bv"]], axis=1)
    qkv_pack = jnp.concatenate([w_qkv, b_qkv], axis=0)            # (S+1, 3S)

    width = max(S, ffdim)
    mask_add = jnp.where(
        jnp.tril(jnp.ones((S, S), dtype=bool)), 0.0, NEG_INF
    ).astype(jnp.float32)

    pieces, layout = [], {}
    off = 0

    def add(name, a):
        nonlocal off
        r, c = a.shape
        layout[name] = (off, r, c)
        pieces.append(jnp.pad(a, ((0, 0), (0, width - c))))
        off += r

    add("mask", mask_add)          # (S, S) additive causal mask
    add("w1", params["w1"])        # (S, ffdim)
    add("b1", params["b1"])        # (1, ffdim)
    add("w2", params["w2"])        # (ffdim, ffdim/2)
    add("b2", params["b2"])        # (1, ffdim/2)
    add("w3t", params["w3"].T)     # (ffdim/4, ffdim/2) -- tail layer done on VPU
    add("b3", params["b3"])        # (1, ffdim/4)
    add("wot", params["wo"].T)     # (1, ffdim/4)       -- output head done on VPU
    add("bo", params["bo"])        # (1, 1)

    mlp_pack = jnp.concatenate(pieces, axis=0)                    # (R, width)
    return qkv_pack, mlp_pack, layout


def make_kernel(seq_len, layout):
    S = seq_len

    def kernel(x_ref, qkv_ref, mlp_ref, out_ref):
        def get(name):
            off, r, c = layout[name]
            return mlp_ref[off:off + r, 0:c]

        x = x_ref[...]                                            # (B, S)

        # --- Attention_basic: fused q/k/v projection (single MXU pass) ---
        w_qkv = qkv_ref[0:S, :]                                   # (S, 3S)
        b_qkv = qkv_ref[S:S + 1, :]                               # (1, 3S)
        qkv = jnp.dot(x, w_qkv, preferred_element_type=jnp.float32) + b_qkv
        q = qkv[:, 0:S]
        k = qkv[:, S:2 * S]
        v = qkv[:, 2 * S:3 * S]

        # scores[b,i,j] = q[b,i]*k[b,j] + additive causal mask (0 / -1e9)
        scores = q[:, :, None] * k[:, None, :] + get("mask")[None, :, :]

        # Softmax fused with the value reduction: only the (B,S) row sums get
        # normalized, not the full (B,S,S) attention matrix.
        m = jnp.max(scores, axis=-1, keepdims=True)
        e = jnp.exp(scores - m)                                   # (B, S, S)
        num = jnp.sum(e * v[:, None, :], axis=-1)                 # (B, S)
        den = jnp.sum(e, axis=-1)                                 # (B, S)
        attn_out = num * pl.reciprocal(den, approx=False)         # (B, S)

        # --- MLP head: w1/w2 on the MXU, tiny w3/wo tails on VPU + lane reduce ---
        h = jnp.dot(attn_out, get("w1"), preferred_element_type=jnp.float32) + get("b1")
        h = jnp.maximum(h, 0.0)
        h = jnp.dot(h, get("w2"), preferred_element_type=jnp.float32) + get("b2")
        h = jnp.maximum(h, 0.0)
        # linear3 (ffdim/2 -> ffdim/4): broadcast-multiply + lane reduction
        h = jnp.sum(h[:, None, :] * get("w3t")[None, :, :], axis=-1) + get("b3")
        h = jnp.maximum(h, 0.0)
        # outlayer (ffdim/4 -> 1): dot-as-lane-reduce
        out_ref[...] = jnp.sum(h * get("wot"), axis=-1, keepdims=True) + get("bo")

    return kernel


def forecasting_model(x, qkv_pack, mlp_pack, layout, seq_len):
    B = x.shape[0]
    kernel = make_kernel(seq_len, layout)
    vmem = pl.BlockSpec(memory_space=pltpu.MemorySpace.VMEM)
    # Whole problem fits VMEM (a few KiB << 64 MiB on v7x): full-array blocks,
    # no grid.  Single launch = 3 input DMAs + 1 output DMA.
    # TODO(synk): for large B (esp. v7x's 2 TensorCores) add a batch grid axis
    # with dimension_semantics=("parallel",); at B=2 the gridless call is cheaper.
    return pl.pallas_call(
        kernel,
        out_shape=jax.ShapeDtypeStruct((B, 1), jnp.float32),
        in_specs=[vmem, vmem, vmem],
        out_specs=vmem,
    )(x, qkv_pack, mlp_pack)


def forecasting_model_ref(x, params):
    """Pure-JAX reference mirroring the PyTorch forward."""
    q = x @ params["wq"] + params["bq"]
    k = x @ params["wk"] + params["bk"]
    v = x @ params["wv"] + params["bv"]
    scores = q[:, :, None] * k[:, None, :]
    S = x.shape[1]
    causal = jnp.tril(jnp.ones((S, S), dtype=bool))
    scores = jnp.where(causal[None], scores, NEG_INF)
    attn = jax.nn.softmax(scores, axis=-1)
    attn_out = jnp.einsum("bij,bj->bi", attn, v)
    h = jax.nn.relu(attn_out @ params["w1"] + params["b1"])
    h = jax.nn.relu(h @ params["w2"] + params["b2"])
    h = jax.nn.relu(h @ params["w3"] + params["b3"])
    return h @ params["wo"] + params["bo"]


if __name__ == "__main__":
    B, SEQ_LEN, FFDIM = 2, 16, 16   # small shapes: ffdim -> 16, 8, 4, 1

    key = jax.random.PRNGKey(0)
    kx, kp = jax.random.split(key)
    x = jax.random.normal(kx, (B, SEQ_LEN), dtype=jnp.float32)
    params = init_params(kp, SEQ_LEN, FFDIM)

    # Pack once (amortized across calls), then launch the fused kernel.
    qkv_pack, mlp_pack, layout = pack_params(params, SEQ_LEN, FFDIM)

    out = forecasting_model(x, qkv_pack, mlp_pack, layout, SEQ_LEN)
    out = jax.block_until_ready(out)

    ref = forecasting_model_ref(x, params)
    assert out.shape == (B, 1), out.shape
    assert jnp.allclose(out, ref, atol=1e-5, rtol=1e-5), (out, ref)

    print("KERNEL_OK")
</pallas_src>

<mosaic_0001>
module attributes {stable_mosaic.version = 11 : i64} {
  func.func @kernel(%arg0: memref<2x16xf32, #tpu.memory_space<vmem>>, %arg1: memref<17x48xf32, #tpu.memory_space<vmem>>, %arg2: memref<57x16xf32, #tpu.memory_space<vmem>>, %arg3: memref<2x1xf32, #tpu.memory_space<vmem>>) attributes {dimension_semantics = [], scalar_prefetch = 0 : i64, scratch_operands = 0 : i64, tpu.core_type = #tpu.core_type<tc>} {
    %c0 = arith.constant 0 : index
    %c0_0 = arith.constant 0 : index
    %0 = vector.load %arg0[%c0, %c0_0] : memref<2x16xf32, #tpu.memory_space<vmem>>, vector<2x16xf32>
    %c0_1 = arith.constant 0 : index
    %c0_2 = arith.constant 0 : index
    %1 = vector.load %arg1[%c0_1, %c0_2] : memref<17x48xf32, #tpu.memory_space<vmem>>, vector<16x48xf32>
    %c16 = arith.constant 16 : index
    %c0_3 = arith.constant 0 : index
    %2 = vector.load %arg1[%c16, %c0_3] : memref<17x48xf32, #tpu.memory_space<vmem>>, vector<1x48xf32>
    %cst = arith.constant dense<0.000000e+00> : vector<2x48xf32>
    %3 = tpu.matmul %0, %1, %cst {dimension_numbers = #tpu.dot_dimension_numbers<[1], [0], [0], [1], [0, 0, 1, 1], [], []>} : vector<2x16xf32>, vector<16x48xf32>, vector<2x48xf32> -> vector<2x48xf32>
    %4 = vector.broadcast %2 : vector<1x48xf32> to vector<2x48xf32>
    %5 = arith.addf %3, %4 : vector<2x48xf32>
    %6 = vector.extract_strided_slice %5 {offsets = [0, 0], sizes = [2, 16], strides = [1, 1]} : vector<2x48xf32> to vector<2x16xf32>
    %7 = vector.extract_strided_slice %5 {offsets = [0, 16], sizes = [2, 16], strides = [1, 1]} : vector<2x48xf32> to vector<2x16xf32>
    %8 = vector.extract_strided_slice %5 {offsets = [0, 32], sizes = [2, 16], strides = [1, 1]} : vector<2x48xf32> to vector<2x16xf32>
    %9 = vector.shape_cast %6 : vector<2x16xf32> to vector<2x16x1xf32>
    %10 = vector.shape_cast %7 : vector<2x16xf32> to vector<2x1x16xf32>
    %11 = vector.broadcast %9 : vector<2x16x1xf32> to vector<2x16x16xf32>
    %12 = vector.broadcast %10 : vector<2x1x16xf32> to vector<2x16x16xf32>
    %13 = arith.mulf %11, %12 : vector<2x16x16xf32>
    %c0_4 = arith.constant 0 : index
    %c0_5 = arith.constant 0 : index
    %14 = vector.load %arg2[%c0_4, %c0_5] : memref<57x16xf32, #tpu.memory_space<vmem>>, vector<16x16xf32>
    %15 = vector.shape_cast %14 : vector<16x16xf32> to vector<1x16x16xf32>
    %16 = vector.broadcast %15 : vector<1x16x16xf32> to vector<2x16x16xf32>
    %17 = arith.addf %13, %16 : vector<2x16x16xf32>
    %cst_6 = arith.constant dense<0xFF800000> : vector<2x16xf32>
    %18 = vector.multi_reduction <maximumf>, %17, %cst_6 [2] : vector<2x16x16xf32> to vector<2x16xf32>
    %19 = vector.shape_cast %18 : vector<2x16xf32> to vector<2x16x1xf32>
    %20 = vector.broadcast %19 : vector<2x16x1xf32> to vector<2x16x16xf32>
    %21 = arith.subf %17, %20 : vector<2x16x16xf32>
    %22 = math.exp %21 : vector<2x16x16xf32>
    %23 = vector.shape_cast %8 : vector<2x16xf32> to vector<2x1x16xf32>
    %24 = vector.broadcast %23 : vector<2x1x16xf32> to vector<2x16x16xf32>
    %25 = arith.mulf %22, %24 : vector<2x16x16xf32>
    %cst_7 = arith.constant dense<0.000000e+00> : vector<2x16xf32>
    %26 = vector.multi_reduction <add>, %25, %cst_7 [2] : vector<2x16x16xf32> to vector<2x16xf32>
    %cst_8 = arith.constant dense<0.000000e+00> : vector<2x16xf32>
    %27 = vector.multi_reduction <add>, %22, %cst_8 [2] : vector<2x16x16xf32> to vector<2x16xf32>
    %28 = tpu.reciprocal %27 : vector<2x16xf32> -> vector<2x16xf32>
    %29 = arith.mulf %26, %28 : vector<2x16xf32>
    %c16_9 = arith.constant 16 : index
    %c0_10 = arith.constant 0 : index
    %30 = vector.load %arg2[%c16_9, %c0_10] : memref<57x16xf32, #tpu.memory_space<vmem>>, vector<16x16xf32>
    %cst_11 = arith.constant dense<0.000000e+00> : vector<2x16xf32>
    %31 = tpu.matmul %29, %30, %cst_11 {dimension_numbers = #tpu.dot_dimension_numbers<[1], [0], [0], [1], [0, 0, 1, 1], [], []>} : vector<2x16xf32>, vector<16x16xf32>, vector<2x16xf32> -> vector<2x16xf32>
    %c32 = arith.constant 32 : index
    %c0_12 = arith.constant 0 : index
    %32 = vector.load %arg2[%c32, %c0_12] : memref<57x16xf32, #tpu.memory_space<vmem>>, vector<1x16xf32>
    %33 = vector.broadcast %32 : vector<1x16xf32> to vector<2x16xf32>
    %34 = arith.addf %31, %33 : vector<2x16xf32>
    %cst_13 = arith.constant 0.000000e+00 : f32
    %35 = vector.broadcast %cst_13 : f32 to vector<2x16xf32>
    %36 = arith.maximumf %34, %35 : vector<2x16xf32>
    %c33 = arith.constant 33 : index
    %c0_14 = arith.constant 0 : index
    %37 = vector.load %arg2[%c33, %c0_14] : memref<57x16xf32, #tpu.memory_space<vmem>>, vector<16x8xf32>
    %cst_15 = arith.constant dense<0.000000e+00> : vector<2x8xf32>
    %38 = tpu.matmul %36, %37, %cst_15 {dimension_numbers = #tpu.dot_dimension_numbers<[1], [0], [0], [1], [0, 0, 1, 1], [], []>} : vector<2x16xf32>, vector<16x8xf32>, vector<2x8xf32> -> vector<2x8xf32>
    %c49 = arith.constant 49 : index
    %c0_16 = arith.constant 0 : index
    %39 = vector.load %arg2[%c49, %c0_16] : memref<57x16xf32, #tpu.memory_space<vmem>>, vector<1x8xf32>
    %40 = vector.broadcast %39 : vector<1x8xf32> to vector<2x8xf32>
    %41 = arith.addf %38, %40 : vector<2x8xf32>
    %cst_17 = arith.constant 0.000000e+00 : f32
    %42 = vector.broadcast %cst_17 : f32 to vector<2x8xf32>
    %43 = arith.maximumf %41, %42 : vector<2x8xf32>
    %44 = vector.shape_cast %43 : vector<2x8xf32> to vector<2x1x8xf32>
    %c50 = arith.constant 50 : index
    %c0_18 = arith.constant 0 : index
    %45 = vector.load %arg2[%c50, %c0_18] : memref<57x16xf32, #tpu.memory_space<vmem>>, vector<4x8xf32>
    %46 = vector.shape_cast %45 : vector<4x8xf32> to vector<1x4x8xf32>
    %47 = vector.broadcast %44 : vector<2x1x8xf32> to vector<2x4x8xf32>
    %48 = vector.broadcast %46 : vector<1x4x8xf32> to vector<2x4x8xf32>
    %49 = arith.mulf %47, %48 : vector<2x4x8xf32>
    %cst_19 = arith.constant dense<0.000000e+00> : vector<2x4xf32>
    %50 = vector.multi_reduction <add>, %49, %cst_19 [2] : vector<2x4x8xf32> to vector<2x4xf32>
    %c54 = arith.constant 54 : index
    %c0_20 = arith.constant 0 : index
    %51 = vector.load %arg2[%c54, %c0_20] : memref<57x16xf32, #tpu.memory_space<vmem>>, vector<1x4xf32>
    %52 = vector.broadcast %51 : vector<1x4xf32> to vector<2x4xf32>
    %53 = arith.addf %50, %52 : vector<2x4xf32>
    %cst_21 = arith.constant 0.000000e+00 : f32
    %54 = vector.broadcast %cst_21 : f32 to vector<2x4xf32>
    %55 = arith.maximumf %53, %54 : vector<2x4xf32>
    %c55 = arith.constant 55 : index
    %c0_22 = arith.constant 0 : index
    %56 = vector.load %arg2[%c55, %c0_22] : memref<57x16xf32, #tpu.memory_space<vmem>>, vector<1x4xf32>
    %57 = vector.broadcast %56 : vector<1x4xf32> to vector<2x4xf32>
    %58 = arith.mulf %55, %57 : vector<2x4xf32>
    %cst_23 = arith.constant dense<0.000000e+00> : vector<2xf32>
    %59 = vector.multi_reduction <add>, %58, %cst_23 [1] : vector<2x4xf32> to vector<2xf32>
    %60 = vector.shape_cast %59 : vector<2xf32> to vector<2x1xf32>
    %c56 = arith.constant 56 : index
    %c0_24 = arith.constant 0 : index
    %61 = vector.load %arg2[%c56, %c0_24] : memref<57x16xf32, #tpu.memory_space<vmem>>, vector<1x1xf32>
    %62 = vector.broadcast %61 : vector<1x1xf32> to vector<2x1xf32>
    %63 = arith.addf %60, %62 : vector<2x1xf32>
    %c0_25 = arith.constant 0 : index
    %c0_26 = arith.constant 0 : index
    %64 = vector.load %arg3[%c0_25, %c0_26] : memref<2x1xf32, #tpu.memory_space<vmem>>, vector<2x1xf32>
    tpu.vector_store %arg3[%c0_25, %c0_26], %63 {strides = array<i32>} : memref<2x1xf32, #tpu.memory_space<vmem>>, vector<2x1xf32>,
    return
  }
}

</mosaic_0001>

<bundles_post_ra>
// kernel: tpu_custom_call.1
= control target key start
LH: loop header
LB: loop body
LE: loop exit
PB: predicated region body
PF: predicated region fallthrough
CT: control target
= control target key end

     0   :  { %v44_v0 = vlaneseq  ;;  %vm19_vm0 = vcmask 130048   ;;  %s418_s20 = smov 16   ;;  %vm93_vm1 = vcmask 261248   ;;  %s553_s1 = inlined_call_operand.vmem [shape: f32[17,48], index: 1, kind: input, shape index: {}]   ;;  %s554_s0 = inlined_call_operand.vmem [shape: f32[2,16], index: 0, kind: input, shape index: {}]   ;;  %s555_s2 = inlined_call_operand.vmem [shape: f32[57,16], index: 2, kind: input, shape index: {}]   ;;  %s556_s3 = inlined_call_operand.vmem [shape: f32[2,1], index: 3, kind: output, shape index: {}]  }
   0x1   :  { %v16_v1 = vld [vmem:[%s553_s1 + $0x8] sm:$0xff]  ;;  %v15_v2 = vld [vmem:[%s553_s1] sm:$0xff]  ;;  %v396_v7 = vld [vmem:[%s553_s1 + $0x10] ss:$0 sm:$0xff]  ;;  %s419_s1 = smov 112  }
   0x2   :  { %37 = vmatpush.msra.mxu0 %v16_v1  ;;  %v14_v3 = vld [vmem:[%s554_s0] sm:$0x3]  ;;  %v45_v4 = vshrl.u32 %v44_v0, 7  ;;  %v80_v6 = vld [vmem:[%s555_s2 + $0x8] sm:$0xff] }
   0x3   :  { %v79_v5 = vld [vmem:[%s555_s2] sm:$0xff] }
   0x4   :  { %38 = vmatpush.msra.mxu0 %v15_v2  ;;  %390 = vset.pattern.permute.xlu1 %v45_v4  ;;  %v52_v12 = vadd.s32 8, %v45_v4 }
   0x5   :  { %382 = vmatmul.msk.f32.vlgmr.msra.gmra.mxu0 %vm19_vm0, %v14_v3  ;;  %388 = vset.pattern.permute.xlu0 %v45_v4 }
   0x6   :  { %392 = vset.pattern.permute.xlu2 %v45_v4 }
   0x7   :  { %83 = vrot.lane.b32.xlu2 %v79_v5, %s418_s20 }
   0xf   :  { %85 = vrot.lane.b32.xlu2 %v80_v6, %s418_s20 }
  0x61   :  { %v84_v15 = vpop.permute.xlu2 %83 }
  0x69   :  { %v86_v25 = vpop.permute.xlu2 %85 }
  0x82   :  { %v40_v8 = vpop.f32.mrf.mxu0 }
  0x83   :  { %v41_v9 = vadd.f32 %v396_v7, %v40_v8 }
  0x85   :  { %v43_v10 = vperm.slane %v41_v9, 0  ;;  %v56_v11 = vperm.slane %v41_v9, 1  ;;  %v70_v13 = vrot.slane %v41_v9, 1  ;;  %v245_v9 = vld [vmem:[%s555_s2 + $0x18] sm:$0xff] }
  0x86   :  { %280 = vmatpush.msra.mxu1 %v245_v9 }
  0x87   :  { %61 = vperm.xlu1 %390, %v56_v11   ;;  %48 = vperm.xlu0 %388, %v43_v10   ;;  %v72_v14 = vperm.slane %v70_v13, 0 }
  0x8f   :  { %391 = vset.pattern.permute.xlu1 %v52_v12  ;;  %389 = vset.pattern.permute.xlu0 %v52_v12 }
  0x97   :  { %67 = vperm.xlu1 %391, %v56_v11   ;;  %54 = vperm.xlu0 %389, %v43_v10  }
  0x9f   :  { %393 = vset.pattern.permute.xlu1 %v45_v4 }
  0xf9   :  { %v62_v16 = vpop.permute.xlu1 %61  ;;  %v49_v17 = vpop.permute.xlu0 %48 }
  0xfa   :  { %v77_v18 = vmul.f32 %v72_v14, %v62_v16  ;;  %v75_v19 = vmul.f32 %v49_v17, %v43_v10 }
  0xfc   :  { %v89_v20 = vadd.f32 %v84_v15, %v75_v19  ;;  %v91_v21 = vadd.f32 %v84_v15, %v77_v18 }
  0xfe   :  { %v100_v22 = vsel %vm93_vm1, %v91_v21, -inf  ;;  %v94_v23 = vsel %vm93_vm1, %v89_v20, -inf }
  0xff   :  { %101 = vmax.xlane.f32.xlu0 %v100_v22  ;;  %95 = vmax.xlane.f32.xlu1 %v94_v23 }
 0x109   :  { %v55_v24 = vpop.permute.xlu0 %54  ;;  %v68_v27 = vpop.permute.xlu1 %67 }
 0x10a   :  { %v76_v26 = vmul.f32 %v55_v24, %v43_v10  ;;  %v78_v29 = vmul.f32 %v72_v14, %v68_v27 }
 0x10c   :  { %v90_v28 = vadd.f32 %v86_v25, %v76_v26  ;;  %v92_v31 = vadd.f32 %v86_v25, %v78_v29 }
 0x10e   :  { %v97_v30 = vsel %vm93_vm1, %v90_v28, -inf  ;;  %v103_v32 = vsel %vm93_vm1, %v92_v31, -inf }
 0x10f   :  { %98 = vmax.xlane.f32.xlu2 %v97_v30 }
 0x117   :  { %104 = vmax.xlane.f32.xlu2 %v103_v32 }
 0x118   :  { %118 = vrot.lane.b32.xlu1 %v43_v10, %s419_s1  ;;  %v244_v10 = vld [vmem:[%s555_s2 + $0x10] sm:$0xff] }
 0x119   :  { %281 = vmatpush.msra.mxu1 %v244_v10  ;;  %v288_v10 = vld [vmem:[%s555_s2 + $0x29] sm:$0xff] }
 0x11a   :  { %308 = vmatpush.msra.mxu2 %v288_v10 }
 0x12f   :  { %120 = vrot.lane.b32.xlu2 %v72_v14, %s419_s1 }
 0x172   :  { %v96_v33 = vpop.xlane.xlu1 %95  ;;  %v102_v35 = vpop.xlane.xlu0 %101 }
 0x173   :  { %v106_v34 = vsub.f32 %v89_v20, %v96_v33  ;;  %v108_v37 = vsub.f32 %v91_v21, %v102_v35  ;;  %v500_v33 = vand.u32 127, %v44_v0 }
 0x175   :  { %v110_v36 = vmul.f32 1.442695, %v106_v34  ;;  %v114_v38 = vmul.f32 1.442695, %v108_v37 }
 0x177   :  { %402 = vpow2.f32 %v110_v36 }
 0x178   :  { %404 = vpow2.f32 %v114_v38 }
 0x17d   :  { %v403_v39 = vpop.eup %402 }
 0x17e   :  { %160 = vrot.lane.b32.xlu0 %v403_v39, %s419_s1  ;;  %v405_v42 = vpop.eup %404 }
 0x182   :  { %v99_v40 = vpop.xlane.xlu2 %98 }
 0x183   :  { %v107_v41 = vsub.f32 %v90_v28, %v99_v40 }
 0x185   :  { %v112_v43 = vmul.f32 1.442695, %v107_v41 }
 0x186   :  { %164 = vrot.lane.b32.xlu0 %v405_v42, %s419_s1 }
 0x187   :  { %406 = vpow2.f32 %v112_v43 }
 0x18a   :  { %v105_v44 = vpop.xlane.xlu2 %104  ;;  %v119_v47 = vpop.permute.xlu1 %118 }
 0x18b   :  { %v109_v45 = vsub.f32 %v92_v31, %v105_v44  ;;  %v124_v50 = vmul.f32 %v403_v39, %v119_v47 }
 0x18d   :  { %v407_v46 = vpop.eup %406  ;;  %v116_v48 = vmul.f32 1.442695, %v109_v45 }
 0x18e   :  { %v125_v49 = vmul.f32 %v407_v46, %v119_v47  ;;  %162 = vrot.lane.b32.xlu1 %v407_v46, %s419_s1 }
 0x18f   :  { %408 = vpow2.f32 %v116_v48 }
 0x190   :  { %134 = vrot.lane.b32.xlu0 %v125_v49, %s419_s1  ;;  %v255_v49 = vadd.s32 4294967288, %v500_v33 }
 0x192   :  { %v121_v52 = vpop.permute.xlu2 %120 }
 0x193   :  { %v126_v53 = vmul.f32 %v405_v42, %v121_v52 }
 0x195   :  { %v409_v51 = vpop.eup %408 }
 0x196   :  { %132 = vrot.lane.b32.xlu1 %v124_v50, %s419_s1  ;;  %166 = vrot.lane.b32.xlu2 %v409_v51, %s419_s1  ;;  %v127_v54 = vmul.f32 %v409_v51, %v121_v52 }
 0x19e   :  { %138 = vrot.lane.b32.xlu1 %v127_v54, %s419_s1  ;;  %136 = vrot.lane.b32.xlu2 %v126_v53, %s419_s1 }
 0x1f0   :  { %v161_v55 = vpop.permute.xlu0 %160  ;;  %v167_v57 = vpop.permute.xlu2 %166 }
 0x1f1   :  { %v172_v56 = vsel %vm19_vm0, %v161_v55, 0.0  ;;  %v181_v59 = vsel %vm19_vm0, %v167_v57, 0.0 }
 0x1f2   :  { %173 = vadd.xlane.f32.xlu0 %v172_v56 }
 0x1f8   :  { %v165_v58 = vpop.permute.xlu0 %164  ;;  %v137_v61 = vpop.permute.xlu2 %136 }
 0x1f9   :  { %v178_v60 = vsel %vm19_vm0, %v165_v58, 0.0  ;;  %v150_v1 = vsel %vm19_vm0, %v137_v61, 0.0 }
 0x1fa   :  { %182 = vadd.xlane.f32.xlu0 %v181_v59  ;;  %179 = vadd.xlane.f32.xlu1 %v178_v60 }
 0x200   :  { %v163_v62 = vpop.permute.xlu1 %162 }
 0x201   :  { %v175_v63 = vsel %vm19_vm0, %v163_v62, 0.0 }
 0x202   :  { %176 = vadd.xlane.f32.xlu2 %v175_v63  ;;  %151 = vadd.xlane.f32.xlu0 %v150_v1  ;;  %v135_v2 = vpop.permute.xlu0 %134 }
 0x203   :  { %v147_v3 = vsel %vm19_vm0, %v135_v2, 0.0 }
 0x204   :  { %148 = vadd.xlane.f32.xlu1 %v147_v3 }
 0x208   :  { %v133_v4 = vpop.permute.xlu1 %132 }
 0x209   :  { %v144_v5 = vsel %vm19_vm0, %v133_v4, 0.0 }
 0x20a   :  { %145 = vadd.xlane.f32.xlu2 %v144_v5 }
 0x210   :  { %v139_v6 = vpop.permute.xlu1 %138 }
 0x211   :  { %v153_v7 = vsel %vm19_vm0, %v139_v6, 0.0 }
 0x212   :  { %154 = vadd.xlane.f32.xlu2 %v153_v7 }
 0x265   :  { %v174_v8 = vpop.xlane.xlu0 %173 }
 0x266   :  { %410 = vrcp.f32 %v174_v8  ;;  %vm189_vm6 = vweird.f32 %v174_v8  ;;  %v193_v35 = vand.u32 2147483647, %v174_v8  ;;  %v195_v37 = vand.u32 2147483648, %v174_v8 }
 0x268   :  { %v196_v50 = vor.u32 1.1754944e-38, %v195_v37  ;;  %vm194_vm14 = vcmp.eq.f32.partialorder %v193_v35, 8.507059e+37 }
 0x26c   :  { %v489_v11 = vpop.eup %410 }
 0x26d   :  { %v180_v12 = vpop.xlane.xlu1 %179  ;;  %v183_v13 = vpop.xlane.xlu0 %182  ;;  %v185_v14 = vmul.f32 %v489_v11, %v174_v8  ;;  %vm190_vm4 = vweird.f32 %v489_v11 }
 0x26e   :  { %412 = vrcp.f32 %v180_v12  ;;  %v223_v27 = vand.u32 2147483648, %v180_v12  ;;  %vm217_vm3 = vweird.f32 %v180_v12  ;;  %v221_v29 = vand.u32 2147483647, %v180_v12  ;;  %vm504_vm8 = vmor %vm189_vm6, %vm190_vm4 }
 0x26f   :  { %414 = vrcp.f32 %v183_v13  ;;  %v186_v16 = vsub.f32 1.0, %v185_v14  ;;  %vm231_vm9 = vweird.f32 %v183_v13  ;;  %v237_v42 = vand.u32 2147483648, %v183_v13 }
 0x270   :  { %v224_v40 = vor.u32 1.1754944e-38, %v223_v27  ;;  %vm222_vm10 = vcmp.eq.f32.partialorder %v221_v29, 8.507059e+37  ;;  %v235_v44 = vand.u32 2147483647, %v183_v13  ;;  %vm262_vm4 = vcmask 1041409  }
 0x271   :  { %v187_v23 = vmul.f32 %v489_v11, %v186_v16  ;;  %v238_v54 = vor.u32 1.1754944e-38, %v237_v42  ;;  %v399_v16 = vld [vmem:[%s555_s2 + $0x36] ss:$0 sm:$0xff]  ;;  %v400_v29 = vld [vmem:[%s555_s2 + $0x37] ss:$0 sm:$0xff]  ;;  %vm376_vm6 = vcmask 1024  }
 0x272   :  { %vm236_vm1 = vcmp.eq.f32.partialorder %v235_v44, 8.507059e+37  ;;  %338 = vperm.xlu2 %392, %v399_v16  }
 0x273   :  { %v188_v30 = vadd.f32 %v489_v11, %v187_v23 }
 0x274   :  { %v413_v15 = vpop.eup %412 }
 0x275   :  { %v415_v17 = vpop.eup %414  ;;  %v213_v18 = vmul.f32 %v413_v15, %v180_v12  ;;  %v177_v19 = vpop.xlane.xlu2 %176  ;;  %vm218_vm2 = vweird.f32 %v413_v15  ;;  %v192_v43 = vsel %vm504_vm8, %v489_v11, %v188_v30  ;;  %v287_v11 = vld [vmem:[%s555_s2 + $0x21] sm:$0xff]  ;;  %v397_v12 = vld [vmem:[%s555_s2 + $0x20] ss:$0 sm:$0xff]  ;;  %v420_v30 = vmov 0  }
 0x276   :  { %v227_v20 = vmul.f32 %v415_v17, %v183_v13  ;;  %416 = vrcp.f32 %v177_v19  ;;  %vm495_vm5 = vmor %vm217_vm3, %vm218_vm2  ;;  %vm232_vm7 = vweird.f32 %v415_v17  ;;  %v209_v0 = vand.u32 2147483648, %v177_v19  ;;  %v152_v52 = vpop.xlane.xlu0 %151  ;;  %309 = vmatpush.msra.mxu2 %v287_v11  ;;  %394 = vset.pattern.permute.xlu0 %v420_v30 }
 0x277   :  { %v214_v21 = vsub.f32 1.0, %v213_v18  ;;  %v207_v47 = vand.u32 2147483647, %v177_v19  ;;  %vm511_vm12 = vmor %vm231_vm9, %vm232_vm7  ;;  %vm203_vm13 = vweird.f32 %v177_v19  ;;  %v197_v57 = vsel %vm194_vm14, %v196_v50, %v192_v43  ;;  %v149_v63 = vpop.xlane.xlu1 %148 }
 0x278   :  { %v228_v22 = vsub.f32 1.0, %v227_v20  ;;  %v210_v56 = vor.u32 1.1754944e-38, %v209_v0  ;;  %vm257_vm3 = vcmask 130112  }
 0x279   :  { %v215_v24 = vmul.f32 %v413_v15, %v214_v21  ;;  %vm208_vm2 = vcmp.eq.f32.partialorder %v207_v47, 8.507059e+37  ;;  %v317_v21 = vld [vmem:[%s555_s2 + $0x32] sm:$0xf]  ;;  %v401_v47 = vld [vmem:[%s555_s2 + $0x38] ss:$0 sm:$0xff] }
 0x27a   :  { %v229_v25 = vmul.f32 %v415_v17, %v228_v22  ;;  %395 = vset.pattern.permute.xlu2 %v420_v30 }
 0x27b   :  { %v216_v26 = vadd.f32 %v413_v15, %v215_v24 }
 0x27c   :  { %v417_v28 = vpop.eup %416  ;;  %v230_v38 = vadd.f32 %v415_v17, %v229_v25 }
 0x27d   :  { %v199_v31 = vmul.f32 %v417_v28, %v177_v19  ;;  %v146_v34 = vpop.xlane.xlu2 %145  ;;  %v220_v36 = vsel %vm495_vm5, %v413_v15, %v216_v26  ;;  %vm204_vm11 = vweird.f32 %v417_v28  ;;  %vm324_vm5 = vcmask 60416  }
 0x27e   :  { %v225_v45 = vsel %vm222_vm10, %v224_v40, %v220_v36  ;;  %v234_v51 = vsel %vm511_vm12, %v415_v17, %v230_v38  ;;  %vm205_vm15 = vmor %vm203_vm13, %vm204_vm11  ;;  %v240_v59 = vmul.f32 %v197_v57, %v146_v34  ;;  %v398_v17 = vld [vmem:[%s555_s2 + $0x31] ss:$0 sm:$0xff] }
 0x27f   :  { %v200_v39 = vsub.f32 1.0, %v199_v31  ;;  %v242_v55 = vmul.f32 %v225_v45, %v152_v52  ;;  %v239_v61 = vsel %vm236_vm1, %v238_v54, %v234_v51 }
 0x280   :  { %v254_v6 = vperm.slane %v240_v59, %v500_v33 }
 0x281   :  { %v201_v46 = vmul.f32 %v417_v28, %v200_v39  ;;  %v259_v3 = vperm.slane %v242_v55, %v500_v33 }
 0x283   :  { %v202_v53 = vadd.f32 %v417_v28, %v201_v46 }
 0x285   :  { %v206_v58 = vsel %vm205_vm15, %v417_v28, %v202_v53  ;;  %v155_v60 = vpop.xlane.xlu2 %154 }
 0x286   :  { %v211_v62 = vsel %vm208_vm2, %v210_v56, %v206_v58  ;;  %v243_v1 = vmul.f32 %v239_v61, %v155_v60 }
 0x287   :  { %v241_v2 = vmul.f32 %v211_v62, %v149_v63 }
 0x288   :  { %v260_v4 = vperm.slane %v243_v1, %v255_v49 }
 0x289   :  { %v256_v5 = vperm.slane %v241_v2, %v255_v49 }
 0x28a   :  { %v261_v7 = vsel %vm257_vm3, %v260_v4, %v259_v3 }
 0x28b   :  { %v258_v8 = vsel %vm257_vm3, %v256_v5, %v254_v6 }
 0x28c   :  { %v263_v9 = vsel %vm262_vm4, %v261_v7, %v258_v8 }
 0x28d   :  { %383 = vmatmul.msk.f32.vlgmr.msra.gmra.mxu1 %vm19_vm0, %v263_v9 }
 0x2cc   :  { %v339_v31 = vpop.permute.xlu2 %338 }
 0x30a   :  { %v283_v13 = vpop.f32.mrf.mxu1 }
 0x30b   :  { %v284_v14 = vadd.f32 %v397_v12, %v283_v13 }
 0x30d   :  { %v286_v15 = vmax.f32 %v284_v14, 0.0 }
 0x30f   :  { %384 = vmatmul.msk.f32.vlgmr.msra.gmra.mxu2 %vm19_vm0, %v286_v15  ;;  %vm369_vm0 = vcmask 25600  }
 0x392   :  { %v311_v18 = vpop.f32.mrf.mxu2 }
 0x393   :  { %v312_v19 = vadd.f32 %v398_v17, %v311_v18 }
 0x395   :  { %v314_v20 = vmax.f32 %v312_v19, 0.0 }
 0x397   :  { %v316_v22 = vrot.slane %v314_v20, 1  ;;  %v318_v23 = vperm.slane %v314_v20, 0 }
 0x399   :  { %v319_v24 = vperm.slane %v316_v22, 0  ;;  %v322_v25 = vmul.f32 %v318_v23, %v317_v21 }
 0x39b   :  { %v325_v26 = vsel %vm324_vm5, %v322_v25, 0.0  ;;  %v323_v27 = vmul.f32 %v319_v24, %v317_v21 }
 0x39c   :  { %326 = vadd.xlane.f32.xlu1 %v325_v26 }
 0x39d   :  { %v328_v28 = vsel %vm324_vm5, %v323_v27, 0.0 }
 0x39e   :  { %329 = vadd.xlane.f32.xlu0 %v328_v28 }
 0x3b5   :  { %352 = vperm.xlu1 %393, %v400_v29  }
 0x40f   :  { %v327_v32 = vpop.xlane.xlu1 %326 }
 0x410   :  { %v341_v35 = vadd.f32 %v339_v31, %v327_v32 }
 0x411   :  { %v330_v34 = vpop.xlane.xlu0 %329 }
 0x412   :  { %v342_v36 = vadd.f32 %v339_v31, %v330_v34  ;;  %v343_v37 = vmax.f32 %v341_v35, 0.0 }
 0x414   :  { %v344_v38 = vmax.f32 %v342_v36, 0.0 }
 0x427   :  { %v353_v39 = vpop.permute.xlu1 %352 }
 0x428   :  { %v355_v40 = vmul.f32 %v353_v39, %v343_v37  ;;  %v356_v41 = vmul.f32 %v353_v39, %v344_v38 }
 0x42a   :  { %360 = vperm.xlu0 %394, %v355_v40   ;;  %363 = vperm.xlu2 %395, %v356_v41  }
 0x484   :  { %v364_v42 = vpop.permute.xlu2 %363 }
 0x485   :  { %v366_v43 = vperm.slane %v364_v42, %v500_v33 }
 0x49c   :  { %v361_v0 = vpop.permute.xlu0 %360 }
 0x49d   :  { %v365_v44 = vperm.slane %v361_v0, %v500_v33 }
 0x49f   :  { %v367_v45 = vsel %vm262_vm4, %v366_v43, %v365_v44 }
 0x4a0   :  { %v370_v46 = vsel %vm369_vm0, %v367_v45, 0.0 }
 0x4a1   :  { %371 = vadd.xlane.f32.xlu1 %v370_v46 }
 0x514   :  { %v372_v48 = vpop.xlane.xlu1 %371 }
 0x515   :  { %v375_v49 = vadd.f32 %v401_v47, %v372_v48 }
 0x517   :  { %377 = vst.msk [vmem:[%s556_s3] sm:$0x3] %vm376_vm6, %v375_v49 }

</bundles_post_ra>
